<compile_context>
chip_gen: v7x
topology: tpu7x:2x2x1
jax: 0.10.0
libtpu: 0.0.40
codegen_flags: <defaults>
</compile_context>

<pallas_src>
import math

import jax
import jax.numpy as jnp
from jax import lax
from jax.experimental import pallas as pl
from jax.experimental.pallas import tpu as pltpu


def _mha_attn_kernel(q_ref, k_ref, bias_ref, wq_ref, bq_ref, wk_ref, bk_ref,
                     out_ref, k_scratch):
    # q_ref    : (tq, D)   bf16  query rows of this q tile
    # k_ref    : (S, D)    bf16  all key rows of this batch (re-DMA'd only when b changes)
    # bias_ref : (1, S)    f32   additive mask bias (0 or -1e9) for this batch
    # wq_ref   : (D, d_k)  bf16  this head's Wq^T columns, pre-scaled by 1/sqrt(d_k)
    # bq_ref   : (1, d_k)  f32   this head's bq, pre-scaled
    # wk_ref   : (D, d_k)  bf16  this head's Wk^T columns
    # bk_ref   : (1, d_k)  f32
    # out_ref  : (tq, S)   out dtype
    # k_scratch: (S, d_k)  bf16  cached K projection for this (batch, head)
    sq = pl.program_id(2)

    @pl.when(sq == 0)
    def _():
        # Project this head's K columns once per (batch, head); reused across q tiles.
        kh = jnp.dot(k_ref[...], wk_ref[...], preferred_element_type=jnp.float32)
        k_scratch[...] = (kh + bk_ref[...]).astype(k_scratch.dtype)

    # Q projection for this q tile (plain x @ W + b; transpose + 1/sqrt(d_k) folded).
    qh = jnp.dot(q_ref[...], wq_ref[...], preferred_element_type=jnp.float32)
    qh = (qh + bq_ref[...]).astype(jnp.bfloat16)                 # (tq, d_k)

    # scores = q_h @ k_h^T via contraction over d_k (no materialized transpose).
    s = lax.dot_general(qh, k_scratch[...],
                        dimension_numbers=(((1,), (1,)), ((), ())),
                        preferred_element_type=jnp.float32)      # (tq, S)
    s = s + bias_ref[...]                    # == masked_fill(mask == 0, -1e9)
    s = s - jnp.max(s, axis=-1, keepdims=True)
    p = jnp.exp(s)                           # f32 exp (v5e-safe)
    p = p * pl.reciprocal(jnp.sum(p, axis=-1, keepdims=True), approx=True)
    # TODO(synk): nn.Dropout(p=0.1) on p_attn is identity in eval mode; training-mode
    # dropout is not applied here.
    out_ref[...] = p.astype(out_ref.dtype)


def _pick_q_tile(S, out_elem_bytes, out_tile_budget_bytes=16 << 20):
    """Largest q-tile dividing S that is 8-aligned (or == S) and whose double-buffered
    (tq, S) output tile fits the byte budget (keeps v7x's 64 MiB VMEM safe)."""
    valid = [t for t in range(1, S + 1) if S % t == 0 and (t == S or t % 8 == 0)]
    within = [t for t in valid if 2 * t * S * out_elem_bytes <= out_tile_budget_bytes]
    return max(within) if within else min(valid)


def multi_head_attention(query, key, mask, wq, bq, wk, bk, *, h,
                         q_tile=None, out_dtype=jnp.float32):
    """query, key: (B, S, d_model); mask: (B, 1, S_total); wq/wk in PyTorch nn.Linear
    layout ([out, in]); bq/bk: (d_model,). Returns p_attn (B, h, S, S) in out_dtype."""
    B, S, D = query.shape
    assert D % h == 0
    d_k = D // h

    if q_tile is None:
        q_tile = _pick_q_tile(S, jnp.dtype(out_dtype).itemsize)
    assert S % q_tile == 0 and (q_tile == S or q_tile % 8 == 0)
    grid_sq = S // q_tile

    # ---- one-time host-side preprocessing (grid-invariant) -----------------------
    scale = 1.0 / math.sqrt(d_k)
    # nn.Linear does x @ W^T + b; fold the transpose, the per-head column split and
    # the 1/sqrt(d_k) score scale into the weight layout: (h, D, d_k) bf16 MXU operands.
    wq_h = (wq * scale).T.reshape(D, h, d_k).transpose(1, 0, 2).astype(jnp.bfloat16)
    bq_h = (bq * scale).reshape(h, 1, d_k).astype(jnp.float32)
    wk_h = wk.T.reshape(D, h, d_k).transpose(1, 0, 2).astype(jnp.bfloat16)
    bk_h = bk.reshape(h, 1, d_k).astype(jnp.float32)

    # PyTorch forward slices the mask to the query length; convert to additive bias.
    mask = mask[:, :, :S]
    bias = jnp.where(mask == 0, jnp.float32(-1000000000.0), jnp.float32(0.0))  # (B,1,S)

    q_bf = query.astype(jnp.bfloat16)
    k_bf = key.astype(jnp.bfloat16)

    return pl.pallas_call(
        _mha_attn_kernel,
        out_shape=jax.ShapeDtypeStruct((B, h, S, S), out_dtype),
        grid_spec=pltpu.PrefetchScalarGridSpec(
            num_scalar_prefetch=0,
            grid=(B, h, grid_sq),
            in_specs=[
                pl.BlockSpec((None, q_tile, D), lambda b, hh, sq: (b, sq, 0)),   # q tile
                pl.BlockSpec((None, S, D),      lambda b, hh, sq: (b, 0, 0)),    # keys of batch b
                pl.BlockSpec((None, 1, S),      lambda b, hh, sq: (b, 0, 0)),    # mask bias
                pl.BlockSpec((None, D, d_k),    lambda b, hh, sq: (hh, 0, 0)),   # Wq^T head cols * scale
                pl.BlockSpec((None, 1, d_k),    lambda b, hh, sq: (hh, 0, 0)),   # bq head * scale
                pl.BlockSpec((None, D, d_k),    lambda b, hh, sq: (hh, 0, 0)),   # Wk^T head cols
                pl.BlockSpec((None, 1, d_k),    lambda b, hh, sq: (hh, 0, 0)),   # bk head
            ],
            out_specs=pl.BlockSpec((None, None, q_tile, S),
                                   lambda b, hh, sq: (b, hh, sq, 0)),
            scratch_shapes=[pltpu.VMEM((S, d_k), jnp.bfloat16)],
        ),
        compiler_params=pltpu.CompilerParams(
            dimension_semantics=("parallel", "parallel", "arbitrary"),
            vmem_limit_bytes=64 * 1024 * 1024),
    )(q_bf, k_bf, bias, wq_h, bq_h, wk_h, bk_h)


if __name__ == "__main__":
    # Small, module-consistent shapes: h=4 heads, d_model=32, batch=2, seq=8.
    B, S, D, H = 2, 8, 32, 4

    key0 = jax.random.PRNGKey(0)
    k_q, k_k, k_wq, k_bq, k_wk, k_bk = jax.random.split(key0, 6)

    query = jax.random.normal(k_q, (B, S, D), dtype=jnp.float32)
    key_in = jax.random.normal(k_k, (B, S, D), dtype=jnp.float32)

    # Deterministic nn.Linear-style init: U(-1/sqrt(in), 1/sqrt(in)).
    bound = 1.0 / math.sqrt(D)
    wq = jax.random.uniform(k_wq, (D, D), minval=-bound, maxval=bound, dtype=jnp.float32)
    bq = jax.random.uniform(k_bq, (D,), minval=-bound, maxval=bound, dtype=jnp.float32)
    wk = jax.random.uniform(k_wk, (D, D), minval=-bound, maxval=bound, dtype=jnp.float32)
    bk = jax.random.uniform(k_bk, (D,), minval=-bound, maxval=bound, dtype=jnp.float32)

    # Padding-style mask (B, 1, S): last two key positions of batch 1 are masked out.
    mask = jnp.ones((B, 1, S), dtype=jnp.float32)
    mask = mask.at[1, 0, S - 2:].set(0.0)

    attn = multi_head_attention(query, key_in, mask, wq, bq, wk, bk, h=H)
    attn = jax.block_until_ready(attn)
    assert attn.shape == (B, H, S, S)

    d_k = D // H
    scale = 1.0 / math.sqrt(d_k)

    # --- pure f32 reference mirroring the PyTorch forward (eval-mode dropout) ------
    q_proj = (query @ wq.T + bq).reshape(B, S, H, d_k).transpose(0, 2, 1, 3)
    k_proj = (key_in @ wk.T + bk).reshape(B, S, H, d_k).transpose(0, 2, 1, 3)
    scores = jnp.einsum('bhqd,bhkd->bhqk', q_proj, k_proj) * scale
    scores = jnp.where(mask[:, None, :, :S] == 0.0, -1000000000.0, scores)
    ref_f32 = jax.nn.softmax(scores, axis=-1)

    # --- bf16-consistent reference (same operand rounding as the kernel's MXU path) -
    def bf16(x):
        return x.astype(jnp.bfloat16).astype(jnp.float32)

    wq_r = bf16((wq * scale).T.reshape(D, H, d_k).transpose(1, 0, 2))
    wk_r = bf16(wk.T.reshape(D, H, d_k).transpose(1, 0, 2))
    qp = bf16(jnp.einsum('bsd,hdk->bhsk', bf16(query), wq_r)
              + (bq * scale).reshape(H, 1, d_k)[None])
    kp = bf16(jnp.einsum('bsd,hdk->bhsk', bf16(key_in), wk_r)
              + bk.reshape(H, 1, d_k)[None])
    scores_b = jnp.einsum('bhqd,bhkd->bhqk', qp, kp)
    scores_b = jnp.where(mask[:, None, :, :S] == 0.0, -1000000000.0, scores_b)
    ref_bf16 = jax.nn.softmax(scores_b, axis=-1)

    # Tight vs. the bf16-consistent reference (only approx reciprocal + accumulation
    # order remain); loose vs. the f32 PyTorch reference (bounds bf16-MXU deviation).
    assert jnp.allclose(attn, ref_bf16, atol=2e-3, rtol=2e-3)
    assert jnp.allclose(attn, ref_f32, atol=5e-2, rtol=5e-2)
    # Softmax rows sum to ~1 (approx reciprocal => not exactly 1).
    assert jnp.allclose(attn.sum(-1), 1.0, atol=5e-3)
    print("KERNEL_OK")
</pallas_src>

<mosaic_0001>
module attributes {stable_mosaic.version = 11 : i64} {
  func.func @_mha_attn_kernel(%arg0: i32, %arg1: i32, %arg2: i32, %arg3: memref<1x8x32xbf16, #tpu.memory_space<vmem>>, %arg4: memref<1x8x32xbf16, #tpu.memory_space<vmem>>, %arg5: memref<1x1x8xf32, #tpu.memory_space<vmem>>, %arg6: memref<1x32x8xbf16, #tpu.memory_space<vmem>>, %arg7: memref<1x1x8xf32, #tpu.memory_space<vmem>>, %arg8: memref<1x32x8xbf16, #tpu.memory_space<vmem>>, %arg9: memref<1x1x8xf32, #tpu.memory_space<vmem>>, %arg10: memref<1x1x8x8xf32, #tpu.memory_space<vmem>>, %arg11: memref<8x8xbf16, #tpu.memory_space<vmem>>) attributes {dimension_semantics = [#tpu.dimension_semantics<parallel>, #tpu.dimension_semantics<parallel>, #tpu.dimension_semantics<arbitrary>], iteration_bounds = array<i64: 2, 4, 1>, scalar_prefetch = 0 : i64, scratch_operands = 1 : i64, tpu.core_type = #tpu.core_type<tc>, window_params = [{transform_indices = @transform_0, window_bounds = array<i64: 1, 8, 32>}, {transform_indices = @transform_1, window_bounds = array<i64: 1, 8, 32>}, {transform_indices = @transform_2, window_bounds = array<i64: 1, 1, 8>}, {transform_indices = @transform_3, window_bounds = array<i64: 1, 32, 8>}, {transform_indices = @transform_4, window_bounds = array<i64: 1, 1, 8>}, {transform_indices = @transform_5, window_bounds = array<i64: 1, 32, 8>}, {transform_indices = @transform_6, window_bounds = array<i64: 1, 1, 8>}, {transform_indices = @transform_7, window_bounds = array<i64: 1, 1, 8, 8>}]} {
    %c0_i32 = arith.constant 0 : i32
    %0 = arith.cmpi eq, %arg2, %c0_i32 : i32
    %1 = arith.extui %0 : i1 to i32
    %c0_i32_0 = arith.constant 0 : i32
    %2 = arith.cmpi ne, %1, %c0_i32_0 : i32
    scf.if %2 {
      %c0_21 = arith.constant 0 : index
      %c0_22 = arith.constant 0 : index
      %c0_23 = arith.constant 0 : index
      %32 = vector.load %arg4[%c0_21, %c0_22, %c0_23] : memref<1x8x32xbf16, #tpu.memory_space<vmem>>, vector<1x8x32xbf16>
      %33 = vector.shape_cast %32 : vector<1x8x32xbf16> to vector<8x32xbf16>
      %c0_24 = arith.constant 0 : index
      %c0_25 = arith.constant 0 : index
      %c0_26 = arith.constant 0 : index
      %34 = vector.load %arg8[%c0_24, %c0_25, %c0_26] : memref<1x32x8xbf16, #tpu.memory_space<vmem>>, vector<1x32x8xbf16>
      %35 = vector.shape_cast %34 : vector<1x32x8xbf16> to vector<32x8xbf16>
      %cst_27 = arith.constant dense<0.000000e+00> : vector<8x8xf32>
      %36 = tpu.matmul %33, %35, %cst_27 {dimension_numbers = #tpu.dot_dimension_numbers<[1], [0], [0], [1], [0, 0, 1, 1], [], []>} : vector<8x32xbf16>, vector<32x8xbf16>, vector<8x8xf32> -> vector<8x8xf32>
      %c0_28 = arith.constant 0 : index
      %c0_29 = arith.constant 0 : index
      %c0_30 = arith.constant 0 : index
      %37 = vector.load %arg9[%c0_28, %c0_29, %c0_30] : memref<1x1x8xf32, #tpu.memory_space<vmem>>, vector<1x1x8xf32>
      %38 = vector.shape_cast %37 : vector<1x1x8xf32> to vector<1x8xf32>
      %39 = vector.broadcast %38 : vector<1x8xf32> to vector<8x8xf32>
      %40 = arith.addf %36, %39 : vector<8x8xf32>
      %41 = arith.truncf %40 : vector<8x8xf32> to vector<8x8xbf16>
      %c0_31 = arith.constant 0 : index
      %c0_32 = arith.constant 0 : index
      %42 = vector.load %arg11[%c0_31, %c0_32] : memref<8x8xbf16, #tpu.memory_space<vmem>>, vector<8x8xbf16>
      tpu.vector_store %arg11[%c0_31, %c0_32], %41 {strides = array<i32>} : memref<8x8xbf16, #tpu.memory_space<vmem>>, vector<8x8xbf16>,
    } else {
    }
    %c0 = arith.constant 0 : index
    %c0_1 = arith.constant 0 : index
    %c0_2 = arith.constant 0 : index
    %3 = vector.load %arg3[%c0, %c0_1, %c0_2] : memref<1x8x32xbf16, #tpu.memory_space<vmem>>, vector<1x8x32xbf16>
    %4 = vector.shape_cast %3 : vector<1x8x32xbf16> to vector<8x32xbf16>
    %c0_3 = arith.constant 0 : index
    %c0_4 = arith.constant 0 : index
    %c0_5 = arith.constant 0 : index
    %5 = vector.load %arg6[%c0_3, %c0_4, %c0_5] : memref<1x32x8xbf16, #tpu.memory_space<vmem>>, vector<1x32x8xbf16>
    %6 = vector.shape_cast %5 : vector<1x32x8xbf16> to vector<32x8xbf16>
    %cst = arith.constant dense<0.000000e+00> : vector<8x8xf32>
    %7 = tpu.matmul %4, %6, %cst {dimension_numbers = #tpu.dot_dimension_numbers<[1], [0], [0], [1], [0, 0, 1, 1], [], []>} : vector<8x32xbf16>, vector<32x8xbf16>, vector<8x8xf32> -> vector<8x8xf32>
    %c0_6 = arith.constant 0 : index
    %c0_7 = arith.constant 0 : index
    %c0_8 = arith.constant 0 : index
    %8 = vector.load %arg7[%c0_6, %c0_7, %c0_8] : memref<1x1x8xf32, #tpu.memory_space<vmem>>, vector<1x1x8xf32>
    %9 = vector.shape_cast %8 : vector<1x1x8xf32> to vector<1x8xf32>
    %10 = vector.broadcast %9 : vector<1x8xf32> to vector<8x8xf32>
    %11 = arith.addf %7, %10 : vector<8x8xf32>
    %12 = arith.truncf %11 : vector<8x8xf32> to vector<8x8xbf16>
    %c0_9 = arith.constant 0 : index
    %c0_10 = arith.constant 0 : index
    %13 = vector.load %arg11[%c0_9, %c0_10] : memref<8x8xbf16, #tpu.memory_space<vmem>>, vector<8x8xbf16>
    %cst_11 = arith.constant dense<0.000000e+00> : vector<8x8xf32>
    %14 = tpu.matmul %12, %13, %cst_11 {dimension_numbers = #tpu.dot_dimension_numbers<[1], [1], [0], [0], [0, 0, 1, 0], [], []>} : vector<8x8xbf16>, vector<8x8xbf16>, vector<8x8xf32> -> vector<8x8xf32>
    %c0_12 = arith.constant 0 : index
    %c0_13 = arith.constant 0 : index
    %c0_14 = arith.constant 0 : index
    %15 = vector.load %arg5[%c0_12, %c0_13, %c0_14] : memref<1x1x8xf32, #tpu.memory_space<vmem>>, vector<1x1x8xf32>
    %16 = vector.shape_cast %15 : vector<1x1x8xf32> to vector<1x8xf32>
    %17 = vector.broadcast %16 : vector<1x8xf32> to vector<8x8xf32>
    %18 = arith.addf %14, %17 : vector<8x8xf32>
    %cst_15 = arith.constant dense<0xFF800000> : vector<8xf32>
    %19 = vector.multi_reduction <maximumf>, %18, %cst_15 [1] : vector<8x8xf32> to vector<8xf32>
    %20 = vector.shape_cast %19 : vector<8xf32> to vector<8x1xf32>
    %21 = vector.broadcast %20 : vector<8x1xf32> to vector<8x8xf32>
    %22 = arith.subf %18, %21 : vector<8x8xf32>
    %23 = math.exp %22 : vector<8x8xf32>
    %cst_16 = arith.constant dense<0.000000e+00> : vector<8xf32>
    %24 = vector.multi_reduction <add>, %23, %cst_16 [1] : vector<8x8xf32> to vector<8xf32>
    %25 = vector.shape_cast %24 : vector<8xf32> to vector<8x1xf32>
    %26 = tpu.reciprocal %25 {approx = true} : vector<8x1xf32> -> vector<8x1xf32>
    %27 = vector.broadcast %26 : vector<8x1xf32> to vector<8x8xf32>
    %28 = arith.mulf %23, %27 : vector<8x8xf32>
    %c0_17 = arith.constant 0 : index
    %c0_18 = arith.constant 0 : index
    %c0_19 = arith.constant 0 : index
    %c0_20 = arith.constant 0 : index
    %29 = vector.load %arg10[%c0_17, %c0_18, %c0_19, %c0_20] : memref<1x1x8x8xf32, #tpu.memory_space<vmem>>, vector<1x1x8x8xf32>
    %30 = vector.shape_cast %29 : vector<1x1x8x8xf32> to vector<8x8xf32>
    %31 = vector.shape_cast %28 : vector<8x8xf32> to vector<1x1x8x8xf32>
    tpu.vector_store %arg10[%c0_17, %c0_18, %c0_19, %c0_20], %31 {strides = array<i32>} : memref<1x1x8x8xf32, #tpu.memory_space<vmem>>, vector<1x1x8x8xf32>,
    return
  }
  func.func @transform_0(%arg0: i32, %arg1: i32, %arg2: i32) -> (i32, i32, i32) {
    %c0_i32 = arith.constant 0 : i32
    %c0_i32_0 = arith.constant 0 : i32
    return %arg0, %arg2, %c0_i32 : i32, i32, i32
  }
  func.func @transform_1(%arg0: i32, %arg1: i32, %arg2: i32) -> (i32, i32, i32) {
    %c0_i32 = arith.constant 0 : i32
    %c0_i32_0 = arith.constant 0 : i32
    %c0_i32_1 = arith.constant 0 : i32
    return %arg0, %c0_i32, %c0_i32_0 : i32, i32, i32
  }
  func.func @transform_2(%arg0: i32, %arg1: i32, %arg2: i32) -> (i32, i32, i32) {
    %c0_i32 = arith.constant 0 : i32
    %c0_i32_0 = arith.constant 0 : i32
    %c0_i32_1 = arith.constant 0 : i32
    return %arg0, %c0_i32, %c0_i32_0 : i32, i32, i32
  }
  func.func @transform_3(%arg0: i32, %arg1: i32, %arg2: i32) -> (i32, i32, i32) {
    %c0_i32 = arith.constant 0 : i32
    %c0_i32_0 = arith.constant 0 : i32
    %c0_i32_1 = arith.constant 0 : i32
    return %arg1, %c0_i32, %c0_i32_0 : i32, i32, i32
  }
  func.func @transform_4(%arg0: i32, %arg1: i32, %arg2: i32) -> (i32, i32, i32) {
    %c0_i32 = arith.constant 0 : i32
    %c0_i32_0 = arith.constant 0 : i32
    %c0_i32_1 = arith.constant 0 : i32
    return %arg1, %c0_i32, %c0_i32_0 : i32, i32, i32
  }
  func.func @transform_5(%arg0: i32, %arg1: i32, %arg2: i32) -> (i32, i32, i32) {
    %c0_i32 = arith.constant 0 : i32
    %c0_i32_0 = arith.constant 0 : i32
    %c0_i32_1 = arith.constant 0 : i32
    return %arg1, %c0_i32, %c0_i32_0 : i32, i32, i32
  }
  func.func @transform_6(%arg0: i32, %arg1: i32, %arg2: i32) -> (i32, i32, i32) {
    %c0_i32 = arith.constant 0 : i32
    %c0_i32_0 = arith.constant 0 : i32
    %c0_i32_1 = arith.constant 0 : i32
    return %arg1, %c0_i32, %c0_i32_0 : i32, i32, i32
  }
  func.func @transform_7(%arg0: i32, %arg1: i32, %arg2: i32) -> (i32, i32, i32, i32) {
    %c0_i32 = arith.constant 0 : i32
    %c0_i32_0 = arith.constant 0 : i32
    return %arg0, %arg1, %arg2, %c0_i32 : i32, i32, i32, i32
  }
}

</mosaic_0001>

<bundles_post_ra>
// kernel: tpu_custom_call.1
= control target key start
LH: loop header
LB: loop body
LE: loop exit
PB: predicated region body
PF: predicated region fallthrough
CT: control target
= control target key end

     0   :  { %s2148_s0 = inlined_call_operand.hbm [shape: bf16[2,8,32], index: 0, kind: input, shape index: {}]   ;;  %s2149_s1 = inlined_call_operand.hbm [shape: bf16[2,8,32], index: 1, kind: input, shape index: {}]   ;;  %s2150_s2 = inlined_call_operand.hbm [shape: f32[2,1,8], index: 2, kind: input, shape index: {}]   ;;  %s2151_s3 = inlined_call_operand.hbm [shape: bf16[4,32,8], index: 3, kind: input, shape index: {}]   ;;  %s2152_s4 = inlined_call_operand.hbm [shape: f32[4,1,8], index: 4, kind: input, shape index: {}]   ;;  %s2153_s5 = inlined_call_operand.hbm [shape: bf16[4,32,8], index: 5, kind: input, shape index: {}]   ;;  %s2154_s6 = inlined_call_operand.hbm [shape: f32[4,1,8], index: 6, kind: input, shape index: {}]   ;;  %s2155_s7 = inlined_call_operand.hbm [shape: f32[2,4,8,8], index: 7, kind: output, shape index: {}]  }
   0x1   :  { %2193 = sst [smem:[#allocation38_spill]] %s2148_s0 }
   0x2   :  { %2194 = sst [smem:[#allocation39_spill]] %s2149_s1 }
   0x3   :  { %2195 = sst [smem:[#allocation40_spill]] %s2151_s3 }
   0x4   :  { %2196 = sst [smem:[#allocation41_spill]] %s2154_s6 }
   0x5   :  { %2197 = sst [smem:[#allocation42_spill]] %s2155_s7 }
   0x6   :  { %12 = vsyncpa [#allocation4], 0 }
   0x7   :  { %14 = vsyncpa [#allocation4 + $0x1], 0 }
   0x8   :  { %15 = vsyncpa [#allocation7], 0 }
   0x9   :  { %17 = vsyncpa [#allocation7 + $0x1], 0 }
   0xa   :  { %18 = vsyncpa [#allocation10], 0 }
   0xb   :  { %20 = vsyncpa [#allocation10 + $0x1], 0 }
   0xc   :  { %21 = vsyncpa [#allocation13], 0 }
   0xd   :  { %23 = vsyncpa [#allocation13 + $0x1], 0 }
   0xe   :  { %24 = vsyncpa [#allocation5], 0 }
   0xf   :  { %26 = vsyncpa [#allocation5 + $0x1], 0  ;;  %s1627_s24 = smov 0   ;;  %s1629_s25 = smov 0  }
  0x10   :  { %s1631_s26 = smov 0   ;;  %s1633_s27 = smov 0  }
  0x11   :  { %s1635_s28 = smov 0   ;;  %s1637_s29 = smov 0  }
  0x12   :  { %s1639_s30 = smov 0   ;;  %s1641_s8 = smov 0  }
  0x13   :  { %s1643_s9 = smov 0   ;;  %s1645_s10 = smov 0  }
  0x14   :  { %s1647_s11 = smov 0   ;;  %s1649_s12 = smov 0  }
  0x15   :  { %s1651_s13 = smov 0   ;;  %s1653_s14 = smov 0  }
  0x16 LB: > { %2198 = sst [smem:[#allocation21_spill]] %s1521_s24  ;;  %s1694_s15 = sadd.s32 4294967295, %s1573_s14   ;;  %s1573_s14 = sphi %s1653_s14, %s32_s14   ;;  %s1569_s13 = sphi %s1651_s13, %s2283_s13   ;;  %s1565_s12 = sphi %s1649_s12, %s2282_s12   ;;  %s1561_s11 = sphi %s1647_s11, %s2281_s11   ;;  %s1557_s10 = sphi %s1645_s10, %s2280_s10   ;;  %s1553_s9 = sphi %s1643_s9, %s2273_s9   ;;  %s1549_s8 = sphi %s1641_s8, %s2272_s8   ;;  %s1545_s30 = sphi %s1639_s30, %s2271_s30   ;;  %s1541_s29 = sphi %s1637_s29, %s2279_s29   ;;  %s1537_s28 = sphi %s1635_s28, %s2278_s28   ;;  %s1533_s27 = sphi %s1633_s27, %s2270_s27   ;;  %s1529_s26 = sphi %s1631_s26, %s2277_s26   ;;  %s1525_s25 = sphi %s1629_s25, %s2276_s25   ;;  %s1521_s24 = sphi %s1627_s24, %s2269_s24  }
  0x17   : > { %2199 = sst [smem:[#allocation22_spill]] %s1525_s25  ;;  %s968_s16 = sadd.s32 4294967294, %s1573_s14  }
  0x18   : > { %2200 = sst [smem:[#allocation23_spill]] %s1537_s28  ;;  %p67_p0 = scmp.ne.s32.totalorder %s1553_s9, %s1549_s8 }
  0x19   : > { %2201 = sst [smem:[#allocation24_spill]] %s1549_s8  ;;  %p68_p1 = scmp.eq.s32.totalorder %s1573_s14, 0 }
  0x1a   : > { %2202 = sst [smem:[#allocation25_spill]] %s1553_s9  ;;  %p73_p2 = scmp.ne.s32.totalorder %s1549_s8, %s1545_s30 }
  0x1b   : > { %2203 = sst [smem:[#allocation26_spill]] %s1557_s10  ;;  %p74_p3 = scmp.eq.s32.totalorder %s1694_s15, 0 }
  0x1c   : > { %2204 = sst [smem:[#allocation27_spill]] %s1561_s11  ;;  %p1704_p4 = por %p68_p1, %p67_p0 }
  0x1d   : > { %2205 = sst [smem:[#allocation28_spill]] %s1573_s14  ;;  %p1709_p5 = por %p74_p3, %p73_p2 }
  0x1e   : > { %2206 = sst [smem:[#allocation29_spill]] %s1694_s15  ;;  %p145_p6 = scmp.ne.s32.totalorder %s1541_s29, %s1537_s28 }
  0x1f   : > { %s2208_s21 = scalar_select %p1709_p5, 1, 0 }
  0x20   : > { %p151_p7 = scmp.ne.s32.totalorder %s1537_s28, %s1533_s27  ;;  %p256_p8 = scmp.ne.s32.totalorder %s1529_s26, %s1525_s25 }
  0x21   : > { %2209 = sst [smem:[#allocation30_spill]] %s2208_s21  ;;  %p1718_p9 = por %p145_p6, %p68_p1 }
  0x22   : > { %p257_p10 = scmp.eq.s32.totalorder %s1694_s15, 7  ;;  %p1723_p11 = por %p151_p7, %p74_p3 }
  0x23   : > { %p262_p12 = scmp.ne.s32.totalorder %s1525_s25, %s1521_s24  ;;  %p263_p0 = scmp.eq.s32.totalorder %s968_s16, 7 }
  0x24   : > { %s2211_s23 = scalar_select %p1723_p11, 1, 0 }
  0x25   : > { %p1729_p13 = por %p257_p10, %p256_p8  ;;  %p1079_p2 = scmp.lt.s32.totalorder %s1573_s14, 8 }
  0x26   : > { %2212 = sst [smem:[#allocation31_spill]] %s2211_s23  ;;  %p1734_p5 = por %p263_p0, %p262_p12 }
  0x27   : > { %s2213_s30 = scalar_select %p1729_p13, 1, 0 }
  0x28   : > { %s2215_s27 = scalar_select %p1734_p5, 1, 0 }
  0x29   : > { %2214 = sst [smem:[#allocation32_spill]] %s2213_s30  ;;  %s1739_s18 = sand.u32 1, %s1553_s9  }
  0x2a   : > { %2216 = sst [smem:[#allocation33_spill]] %s2215_s27  ;;  %s2165_s20 = sshll.u32 %s1739_s18, 2 }
  0x2b   : > { %s2166_s17 = sshll.u32 %s1569_s13, 6  ;;  %p1745_p1 = pnand %p1079_p2, %p1704_p4 }
  0x2c   : > { %s1750_s24 = sand.u32 1, %s1573_s14   ;;  %s2218_s1 = sld [smem:[#allocation39_spill]] }
  0x2d   : > { %s2217_s7 = scalar_select %p1745_p1, 1, 0 }
  0x2e   : > { %s306_s19 = scalar_lea.vmem [#allocation6], %s2165_s20  ;;  %p1765_p3 = pnand %p1079_p2, %p1718_p9 }
  0x2f   : > { %s313_s10 = sshll.u32 %s306_s19, 4  ;;  %p1774_p6 = pneg %p1745_p1  ;;  %s1761_s10 = int_to_ptr.vmem [resolvable:$true] %s313_s10 }
  0x30   : > { %s2219_s11 = scalar_select %p1765_p3, 1, 0 }
  0x31   : > { %s2220_s30 = scalar_select %p1774_p6, 1, 0 }
  0x32   : > { %s1757_s27 = scalar_lea.hbm %s2218_s1, %s2166_s17  ;;  %s1210_s22 = scalar_lea.hbm %s2218_s1, 128 }
  0x33   : > { %s1205_s23 = scalar_lea.hbm %s1757_s27, 64  ;;  %p1211_p9 = scmp.lt.u32.totalorder %s1757_s27, %s2218_s1 }
  0x34   : > { %p1206_p4 = scmp.ne.s32.totalorder %s1757_s27, %s1205_s23  ;;  %p1212_p10 = scmp.lt.u32.totalorder %s1210_s22, %s1205_s23 }
  0x35   : > { %p1214_p0 = scmp.lt.u32.totalorder %s1205_s23, %s1757_s27 }
  0x36   : > { %p1208_p7 = pnand %p1774_p6, %p1206_p4  ;;  %p1213_p12 = por %p1212_p10, %p1211_p9 }
  0x38   : > { %p1209_p8 = pneg %p1208_p7  ;;  %p1215_p2 = por %p1214_p0, %p1213_p12 }
  0x3a   : > { %p1216_p5 = pnand %p1215_p2, %p1209_p8 }
  0x3c   : > { %1219 = shalt.err (!%p1216_p5)
}
  0x3d   : > { %s1220_s25 = scalar_lea.vmem %s1761_s10, 64  ;;  %s1575_s16 = smov [#allocation6]  }
  0x3e   : > { %p1221_p4 = scmp.ne.s32.totalorder %s1761_s10, %s1220_s25  ;;  %s1225_s19 = sshll.u32 %s1575_s16, 4  ;;  %s1226_s19 = int_to_ptr.vmem [resolvable:$false] %s1225_s19 }
  0x3f   : > { %s1227_s17 = scalar_lea.vmem %s1226_s19, 128  ;;  %p1228_p11 = scmp.lt.s32.totalorder %s1761_s10, %s1226_s19 }
  0x40   : > { %p1223_p7 = pnand %p1221_p4, %p1774_p6  ;;  %p1229_p3 = scmp.lt.s32.totalorder %s1227_s17, %s1220_s25 }
  0x42   : > { %p1224_p13 = pneg %p1223_p7  ;;  %p1230_p9 = por %p1229_p3, %p1228_p11 }
  0x44   : > { %p1231_p10 = pnand %p1230_p9, %p1224_p13 }
  0x46   : > { %1234 = shalt.err (!%p1231_p10)
}
  0x47   : > { %s2221_s20 = scalar_lea.sflag [#allocation7], %s1750_s24  ;;  %p984_p5 = scmp.ge.s32.totalorder %s1573_s14, 1 }
  0x48   : > { %1059 = dma.hbm_to_vmem [thread:$0]  (!%p1745_p1), %s1757_s27, 64, %s1761_s10, %s2221_s20  }
  0x49   : > { %p411_p11 = scmp.lt.s32.totalorder %s1573_s14, 9  ;;  %s246_s25 = sadd.s32 1, %s1529_s26 }
  0x4a   : > { %s47_s22 = sadd.s32 1, %s1565_s12  ;;  %s1808_s16 = sand.u32 1, %s1541_s29  }
  0x4b   : > { %p1802_p13 = pnand %p984_p5, %p411_p11  ;;  %p49_p3 = scmp.ge.s32.totalorder %s47_s22, 4 }
  0x4c   : > { %s2180_s19 = sshll.u32 %s1808_s16, 4  ;;  %s2178_s17 = sshll.u32 %s1565_s12, 8 }
  0x4d   : > { %s2222_s23 = scalar_select %p1802_p13, 1, 0 }
  0x4e   : > { %s2285_s22 = smov (%p49_p3, %s47_s22), 0  ;;  %s2225_s10 = sadd.s32 1, %s1569_s13 }
  0x4f   : > { %2223 = sst [smem:[#allocation34_spill]] %s2222_s23  ;;  %s2287_s10 = smov (!%p49_p3, %s2225_s10), %s1569_s13 }
  0x50   : > { %2224 = sst [smem:[#allocation35_spill]] %s2285_s22  ;;  %s135_s27 = ssub.s32 %s1565_s12, %s2285_s22 }
  0x51   : > { %s2226_s3 = sld [smem:[#allocation40_spill]]  ;;  %p53_p8 = scmp.ge.s32.totalorder %s2287_s10, 2 }
  0x52   : > { %p136_p12 = scmp.eq.s32.totalorder %s135_s27, 0  ;;  %s341_s28 = scalar_lea.vmem [#allocation9], %s2180_s19 }
  0x53   : > { %s348_s15 = sshll.u32 %s341_s28, 4  ;;  %s2289_s10 = smov (%p53_p8, %s2287_s10), 0  ;;  %s1837_s15 = int_to_ptr.vmem [resolvable:$true] %s348_s15 }
  0x54   : > { %2227 = sst [smem:[#allocation36_spill]] %s2289_s10  ;;  %s2228_s21 = sadd.s32 1, %s1541_s29 }
  0x55   : > { %s1833_s22 = scalar_select %p136_p12, %s1541_s29, %s2228_s21  }
  0x56   : > { %s55_s8 = ssub.s32 %s1569_s13, %s2289_s10  ;;  %s2229_s20 = sadd.s32 1, %s1553_s9 }
  0x57   : > { %s1824_s14 = scalar_lea.hbm %s2226_s3, %s2178_s17  ;;  %p58_p0 = scmp.eq.s32.totalorder %s55_s8, 0 }
  0x58   : > { %s241_s1 = sor.u32 %s135_s27, %s55_s8  ;;  %s2188_s28 = scalar_lea.sflag [#allocation10], %s1750_s24 }
  0x59   : > { %p244_p2 = scmp.eq.s32.totalorder %s241_s1, 0  ;;  %s1235_s19 = scalar_lea.hbm %s1824_s14, 256 }
  0x5a   : > { %s1842_s17 = scalar_select %p58_p0, %s1553_s9, %s2229_s20  }
  0x5b   : > { %s1845_s23 = scalar_select %p244_p2, %s1529_s26, %s246_s25  }
  0x5c   : > { %2230 = sst [smem:[#allocation37_spill]] %s1842_s17  ;;  %p1236_p4 = scmp.ne.s32.totalorder %s1824_s14, %s1235_s19 }
  0x5d   : > { %p2231_p7 = scmp.ne.s32.totalorder %s2219_s11, 0  ;;  %s1240_s27 = scalar_lea.hbm %s2226_s3, 1024 }
  0x5e   : > { %p1241_p11 = scmp.lt.u32.totalorder %s1824_s14, %s2226_s3  ;;  %p1242_p3 = scmp.lt.u32.totalorder %s1240_s27, %s1235_s19 }
  0x5f   : > { %p1852_p9 = pneg %p2231_p7  ;;  %p1244_p12 = scmp.lt.u32.totalorder %s1235_s19, %s1824_s14 }
  0x60   : > { %p1243_p8 = por %p1242_p3, %p1241_p11 }
  0x61   : > { %s2232_s6 = scalar_select %p1852_p9, 1, 0 }
  0x62   : > { %p1238_p10 = pnand %p1852_p9, %p1236_p4  ;;  %p1245_p0 = por %p1244_p12, %p1243_p8 }
  0x64   : > { %p1239_p5 = pneg %p1238_p10 }
  0x66   : > { %p1246_p2 = pnand %p1245_p0, %p1239_p5 }
  0x68   : > { %1249 = shalt.err (!%p1246_p2)
}
  0x69   : > { %s1250_s25 = scalar_lea.vmem %s1837_s15, 256  ;;  %s1576_s21 = smov [#allocation9]  }
  0x6a   : > { %p1251_p4 = scmp.ne.s32.totalorder %s1837_s15, %s1250_s25  ;;  %s1255_s8 = sshll.u32 %s1576_s21, 4  ;;  %s1256_s8 = int_to_ptr.vmem [resolvable:$false] %s1255_s8 }
  0x6b   : > { %s1257_s1 = scalar_lea.vmem %s1256_s8, 512  ;;  %p1258_p1 = scmp.lt.s32.totalorder %s1837_s15, %s1256_s8 }
  0x6c   : > { %p1253_p10 = pnand %p1251_p4, %p1852_p9  ;;  %p1259_p6 = scmp.lt.s32.totalorder %s1257_s1, %s1250_s25 }
  0x6e   : > { %p1254_p13 = pneg %p1253_p10  ;;  %p1260_p11 = por %p1259_p6, %p1258_p1 }
  0x70   : > { %p1261_p3 = pnand %p1260_p11, %p1254_p13 }
  0x72   : > { %1264 = shalt.err (!%p1261_p3)
}
  0x73   : > { %s1577_s19 = smov 64   ;;  %s1578_s27 = smov 4  }
  0x74   : > { %1065 = dma.hbm_to_vmem [thread:$0]  (!%p2231_p7), %s1824_s14, 256, %s1837_s15, %s2188_s28, %s1577_s19, %s1577_s19, %s1578_s27  }
  0x75   : > { %s2233_s20 = sshll.u32 %s1565_s12, 8  ;;  %s2234_s1 = sshll.u32 %s1808_s16, 4 }
  0x76   : > { %s1885_s8 = scalar_lea.hbm %s2153_s5, %s2233_s20  ;;  %s379_s3 = scalar_lea.vmem [#allocation12], %s2234_s1 }
  0x77   : > { %s386_s10 = sshll.u32 %s379_s3, 4  ;;  %s2192_s17 = scalar_lea.sflag [#allocation13], %s1750_s24  ;;  %s1889_s10 = int_to_ptr.vmem [resolvable:$true] %s386_s10 }
  0x78   : > { %s1265_s9 = scalar_lea.hbm %s1885_s8, 256  ;;  %s1270_s20 = scalar_lea.hbm %s2153_s5, 1024 }
  0x79   : > { %p1266_p1 = scmp.ne.s32.totalorder %s1885_s8, %s1265_s9  ;;  %p1271_p5 = scmp.lt.u32.totalorder %s1885_s8, %s2153_s5 }
  0x7a   : > { %p1272_p8 = scmp.lt.u32.totalorder %s1270_s20, %s1265_s9  ;;  %p1274_p0 = scmp.lt.u32.totalorder %s1265_s9, %s1885_s8 }
  0x7b   : > { %p1268_p6 = pnand %p1266_p1, %p1852_p9 }
  0x7c   : > { %p1273_p12 = por %p1272_p8, %p1271_p5 }
  0x7d   : > { %p1269_p13 = pneg %p1268_p6 }
  0x7e   : > { %p1275_p2 = por %p1274_p0, %p1273_p12 }
  0x80   : > { %p1276_p4 = pnand %p1275_p2, %p1269_p13 }
  0x82   : > { %1279 = shalt.err (!%p1276_p4)
}
  0x83   : > { %s1280_s3 = scalar_lea.vmem %s1889_s10, 256  ;;  %s1579_s1 = smov [#allocation12]  }
  0x84   : > { %p1281_p10 = scmp.ne.s32.totalorder %s1889_s10, %s1280_s3  ;;  %s1285_s14 = sshll.u32 %s1579_s1, 4  ;;  %s1286_s14 = int_to_ptr.vmem [resolvable:$false] %s1285_s14 }
  0x85   : > { %s1287_s15 = scalar_lea.vmem %s1286_s14, 512  ;;  %p1288_p1 = scmp.lt.s32.totalorder %s1889_s10, %s1286_s14 }
  0x86   : > { %p1283_p11 = pnand %p1281_p10, %p1852_p9  ;;  %p1289_p6 = scmp.lt.s32.totalorder %s1287_s15, %s1280_s3 }
  0x88   : > { %p1284_p3 = pneg %p1283_p11  ;;  %p1290_p5 = por %p1289_p6, %p1288_p1 }
  0x8a   : > { %p1291_p8 = pnand %p1290_p5, %p1284_p3 }
  0x8c   : > { %1294 = shalt.err (!%p1291_p8)
}
  0x8d   : > { %1071 = dma.hbm_to_vmem [thread:$0]  (!%p2231_p7), %s1885_s8, 256, %s1889_s10, %s2192_s17, %s1577_s19, %s1577_s19, %s1578_s27  }
  0x8e   : > { %s2235_s9 = sshll.u32 %s1569_s13, 6  ;;  %s2236_s0 = sld [smem:[#allocation38_spill]] }
  0x8f   : > { %s2237_s3 = sshll.u32 %s1739_s18, 2  ;;  %s284_s15 = scalar_lea.sflag [#allocation4], %s1739_s18 }
  0x90   : > { %s287_s1 = scalar_lea.vmem [#allocation3], %s2237_s3  ;;  %p2238_p12 = scmp.ne.s32.totalorder %s2220_s30, 0 }
  0x91   : > { %s295_s14 = sshll.u32 %s287_s1, 4  ;;  %s296_s14 = int_to_ptr.vmem [resolvable:$true] %s295_s14 }
  0x94   : > { %s1923_s21 = scalar_lea.hbm %s2236_s0, %s2235_s9  ;;  %s1300_s27 = scalar_lea.hbm %s2236_s0, 128 }
  0x95   : > { %s1295_s28 = scalar_lea.hbm %s1923_s21, 64  ;;  %p1301_p4 = scmp.lt.u32.totalorder %s1923_s21, %s2236_s0 }
  0x96   : > { %p1296_p13 = scmp.ne.s32.totalorder %s1923_s21, %s1295_s28  ;;  %p1302_p10 = scmp.lt.u32.totalorder %s1300_s27, %s1295_s28 }
  0x97   : > { %p1304_p3 = scmp.lt.u32.totalorder %s1295_s28, %s1923_s21 }
  0x98   : > { %p1298_p0 = pnand %p1296_p13, %p2238_p12  ;;  %p1303_p11 = por %p1302_p10, %p1301_p4 }
  0x9a   : > { %p1299_p2 = pneg %p1298_p0  ;;  %p1305_p1 = por %p1304_p3, %p1303_p11 }
  0x9c   : > { %p1306_p6 = pnand %p1305_p1, %p1299_p2 }
  0x9e   : > { %1309 = shalt.err (!%p1306_p6)
}
  0x9f   : > { %s1310_s20 = scalar_lea.vmem %s296_s14, 64  ;;  %s1580_s25 = smov [#allocation3]  }
  0xa0   : > { %p1311_p5 = scmp.ne.s32.totalorder %s296_s14, %s1310_s20  ;;  %s1315_s3 = sshll.u32 %s1580_s25, 4  ;;  %s1316_s3 = int_to_ptr.vmem [resolvable:$false] %s1315_s3 }
  0xa1   : > { %s1317_s1 = scalar_lea.vmem %s1316_s3, 128  ;;  %p1318_p0 = scmp.lt.s32.totalorder %s296_s14, %s1316_s3 }
  0xa2   : > { %p1313_p8 = pnand %p1311_p5, %p2238_p12  ;;  %p1319_p7 = scmp.lt.s32.totalorder %s1317_s1, %s1310_s20 }
  0xa4   : > { %p1314_p13 = pneg %p1313_p8  ;;  %p1320_p9 = por %p1319_p7, %p1318_p0 }
  0xa6   : > { %p1321_p4 = pnand %p1320_p9, %p1314_p13 }
  0xa8   : > { %1324 = shalt.err (!%p1321_p4)
}
  0xa9   : > { %p2239_p10 = scmp.ne.s32.totalorder %s2217_s7, 0  ;;  %s975_s28 = sshll.u32 %s1569_s13, 4 }
  0xaa   : > { %s323_s10 = scalar_lea.vmem [#allocation8], %s1739_s18  ;;  %s328_s9 = scalar_lea.hbm %s2150_s2, %s975_s28 }
  0xab   : > { %1056 = dma.hbm_to_vmem [thread:$0]  (!%p2239_p10), %s1923_s21, 64, %s296_s14, %s284_s15  }
  0xac   : > { %s330_s19 = sshll.u32 %s323_s10, 4  ;;  %s1325_s25 = scalar_lea.hbm %s328_s9, 16  ;;  %s331_s19 = int_to_ptr.vmem [resolvable:$true] %s330_s19 }
  0xad   : > { %p1326_p2 = scmp.ne.s32.totalorder %s328_s9, %s1325_s25  ;;  %s1330_s1 = scalar_lea.hbm %s2150_s2, 32 }
  0xae   : > { %p1331_p11 = scmp.lt.u32.totalorder %s328_s9, %s2150_s2  ;;  %p1332_p3 = scmp.lt.u32.totalorder %s1330_s1, %s1325_s25 }
  0xaf   : > { %p1328_p7 = pnand %p1326_p2, %p2238_p12  ;;  %p1334_p6 = scmp.lt.u32.totalorder %s1325_s25, %s328_s9 }
  0xb0   : > { %p1333_p1 = por %p1332_p3, %p1331_p11 }
  0xb1   : > { %p1329_p9 = pneg %p1328_p7 }
  0xb2   : > { %p1335_p5 = por %p1334_p6, %p1333_p1 }
  0xb4   : > { %p1336_p8 = pnand %p1335_p5, %p1329_p9 }
  0xb6   : > { %1339 = shalt.err (!%p1336_p8)
}
  0xb7   : > { %s1340_s18 = scalar_lea.vmem %s331_s19, 16  ;;  %s1581_s21 = smov [#allocation8]  }
  0xb8   : > { %p1341_p13 = scmp.ne.s32.totalorder %s331_s19, %s1340_s18  ;;  %s1345_s14 = sshll.u32 %s1581_s21, 4  ;;  %s1346_s14 = int_to_ptr.vmem [resolvable:$false] %s1345_s14 }
  0xb9   : > { %s1347_s15 = scalar_lea.vmem %s1346_s14, 32  ;;  %p1348_p2 = scmp.lt.s32.totalorder %s331_s19, %s1346_s14 }
  0xba   : > { %p1343_p0 = pnand %p1341_p13, %p2238_p12  ;;  %p1349_p7 = scmp.lt.s32.totalorder %s1347_s15, %s1340_s18 }
  0xbc   : > { %p1344_p4 = pneg %p1343_p0  ;;  %p1350_p10 = por %p1349_p7, %p1348_p2 }
  0xbe   : > { %p1351_p3 = pnand %p1350_p10, %p1344_p4 }
  0xc0   : > { %1354 = shalt.err (!%p1351_p3)
}
  0xc1   : > { %p2240_p11 = scmp.ne.s32.totalorder %s2217_s7, 0  ;;  %s2241_s0 = scalar_lea.sflag [#allocation7], %s1750_s24 }
  0xc2   : > { %s979_s30 = sshll.u32 %s1565_s12, 4  ;;  %s361_s27 = scalar_lea.vmem [#allocation11], %s1808_s16 }
  0xc3   : > { %1062 = dma.hbm_to_vmem [thread:$0]  (!%p2240_p11), %s328_s9, 16, %s331_s19, %s2241_s0  }
  0xc4   : > { %s1970_s10 = scalar_lea.hbm %s2152_s4, %s979_s30  ;;  %s368_s7 = sshll.u32 %s361_s27, 4  ;;  %s369_s7 = int_to_ptr.vmem [resolvable:$true] %s368_s7 }
  0xc5   : > { %s1355_s8 = scalar_lea.hbm %s1970_s10, 16  ;;  %p2242_p10 = scmp.ne.s32.totalorder %s2232_s6, 0 }
  0xc6   : > { %p1356_p12 = scmp.ne.s32.totalorder %s1970_s10, %s1355_s8  ;;  %s1360_s25 = scalar_lea.hbm %s2152_s4, 64 }
  0xc7   : > { %p1361_p6 = scmp.lt.u32.totalorder %s1970_s10, %s2152_s4  ;;  %p1362_p5 = scmp.lt.u32.totalorder %s1360_s25, %s1355_s8 }
  0xc8   : > { %p1358_p9 = pnand %p1356_p12, %p2242_p10  ;;  %p1364_p13 = scmp.lt.u32.totalorder %s1355_s8, %s1970_s10 }
  0xc9   : > { %p1363_p8 = por %p1362_p5, %p1361_p6 }
  0xca   : > { %p1359_p1 = pneg %p1358_p9 }
  0xcb   : > { %p1365_p0 = por %p1364_p13, %p1363_p8 }
  0xcd   : > { %p1366_p4 = pnand %p1365_p0, %p1359_p1 }
  0xcf   : > { %1369 = shalt.err (!%p1366_p4)
}
  0xd0   : > { %s1370_s1 = scalar_lea.vmem %s369_s7, 16  ;;  %s1582_s18 = smov [#allocation11]  }
  0xd1   : > { %p1371_p2 = scmp.ne.s32.totalorder %s369_s7, %s1370_s1  ;;  %s1375_s21 = sshll.u32 %s1582_s18, 4  ;;  %s1376_s21 = int_to_ptr.vmem [resolvable:$false] %s1375_s21 }
  0xd2   : > { %s1377_s14 = scalar_lea.vmem %s1376_s21, 32  ;;  %p1378_p11 = scmp.lt.s32.totalorder %s369_s7, %s1376_s21 }
  0xd3   : > { %p1373_p7 = pnand %p1371_p2, %p2242_p10  ;;  %p1379_p12 = scmp.lt.s32.totalorder %s1377_s14, %s1370_s1 }
  0xd5   : > { %p1374_p3 = pneg %p1373_p7  ;;  %p1380_p9 = por %p1379_p12, %p1378_p11 }
  0xd7   : > { %p1381_p5 = pnand %p1380_p9, %p1374_p3 }
  0xd9   : > { %1384 = shalt.err (!%p1381_p5)
}
  0xda   : > { %p2243_p6 = scmp.ne.s32.totalorder %s2219_s11, 0  ;;  %s2244_s15 = scalar_lea.sflag [#allocation10], %s1750_s24 }
  0xdb   : > { %s2245_s28 = sld [smem:[#allocation41_spill]]  ;;  %s399_s8 = scalar_lea.vmem [#allocation14], %s1808_s16 }
  0xdc   : > { %1068 = dma.hbm_to_vmem [thread:$0]  (!%p2243_p6), %s1970_s10, 16, %s369_s7, %s2244_s15  }
  0xdd   : > { %s406_s9 = sshll.u32 %s399_s8, 4  ;;  %s407_s9 = int_to_ptr.vmem [resolvable:$true] %s406_s9 }
  0xe1   : > { %s2246_s19 = smov %s2245_s28  ;;  %s1997_s27 = scalar_lea.hbm %s2245_s28, %s979_s30 }
  0xe2   : > { %s1385_s25 = scalar_lea.hbm %s1997_s27, 16  ;;  %s1390_s7 = scalar_lea.hbm %s2246_s19, 64 }
  0xe3   : > { %p1386_p1 = scmp.ne.s32.totalorder %s1997_s27, %s1385_s25  ;;  %p1391_p0 = scmp.lt.u32.totalorder %s1997_s27, %s2246_s19 }
  0xe4   : > { %p1392_p4 = scmp.lt.u32.totalorder %s1390_s7, %s1385_s25  ;;  %p1394_p7 = scmp.lt.u32.totalorder %s1385_s25, %s1997_s27 }
  0xe5   : > { %p1388_p8 = pnand %p1386_p1, %p2242_p10 }
  0xe6   : > { %p1393_p2 = por %p1392_p4, %p1391_p0 }
  0xe7   : > { %p1389_p13 = pneg %p1388_p8 }
  0xe8   : > { %p1395_p3 = por %p1394_p7, %p1393_p2 }
  0xea   : > { %p1396_p11 = pnand %p1395_p3, %p1389_p13 }
  0xec   : > { %1399 = shalt.err (!%p1396_p11)
}
  0xed   : > { %s1400_s16 = scalar_lea.vmem %s407_s9, 16  ;;  %s1583_s30 = smov [#allocation14]  }
  0xee   : > { %p1401_p12 = scmp.ne.s32.totalorder %s407_s9, %s1400_s16  ;;  %s1405_s18 = sshll.u32 %s1583_s30, 4  ;;  %s1406_s18 = int_to_ptr.vmem [resolvable:$false] %s1405_s18 }
  0xef   : > { %s1407_s21 = scalar_lea.vmem %s1406_s18, 32  ;;  %p1408_p1 = scmp.lt.s32.totalorder %s407_s9, %s1406_s18 }
  0xf0   : > { %p1403_p9 = pnand %p1401_p12, %p2242_p10  ;;  %p1409_p8 = scmp.lt.s32.totalorder %s1407_s21, %s1400_s16 }
  0xf2   : > { %p1404_p5 = pneg %p1403_p9  ;;  %p1410_p6 = por %p1409_p8, %p1408_p1 }
  0xf4   : > { %p1411_p0 = pnand %p1410_p6, %p1404_p5 }
  0xf6   : > { %1414 = shalt.err (!%p1411_p0)
}
  0xf7   : > { %p2247_p4 = scmp.ne.s32.totalorder %s2219_s11, 0  ;;  %s2248_s14 = scalar_lea.sflag [#allocation13], %s1750_s24 }
  0xf8   : > { %s2249_s15 = sld [smem:[#allocation34_spill]] }
  0xf9   : > { %1074 = dma.hbm_to_vmem [thread:$0]  (!%p2247_p4), %s1997_s27, 16, %s407_s9, %s2248_s14  }
  0xfe   : > { %p2250_p13 = scmp.ne.s32.totalorder %s2249_s15, 0 }
  0xff   : > { %s2251_s6 = sld [smem:[#allocation24_spill]] (!%p2250_p13)  ;;  %s2252_s0 = sld [smem:[#allocation30_spill]] (!%p2250_p13) }
 0x100   : > { %415 = sbr.rel (%p2250_p13) target bundleno = 1071 (0x42f), region = 48 }
 0x105   : > { %s2022_s17 = sand.u32 (!%p2250_p13), 1, %s2251_s6   ;;  %p2253_p10 = scmp.ne.s32.totalorder (!%p2250_p13), %s2252_s0, 0 }
 0x106   : > { %s985_s28 = sshll.u32 (!%p2250_p13), %s2022_s17, 2  ;;  %s418_s8 = scalar_lea.sflag (!%p2250_p13), [#allocation4], %s2022_s17 }
 0x107   : > { %s2026_s25 = scalar_lea.vmem [#allocation3], %s985_s28 }
 0x108   : > { %1500 = dma.done.wait (%p2253_p10), %s418_s8, 64  }
 0x109   : > { %1502 = vsyncadd (%p2253_p10), %s418_s8, 4294967232  ;;  %s2254_s24 = sld [smem:[#allocation29_spill]]  ;;  %s430_s9 = scalar_lea.vmem [#allocation6], %s985_s28 }
 0x10f   : > { %s426_s11 = sand.u32 1, %s2254_s24  }
 0x110   : > { %s427_s27 = scalar_lea.sflag [#allocation7], %s426_s11 }
 0x111   : > { %1504 = dma.done.wait (%p2253_p10), %s427_s27, 80  }
 0x112   : > { %1506 = vsyncadd (%p2253_p10), %s427_s27, 4294967216  ;;  %s2255_s20 = sld [smem:[#allocation23_spill]]  ;;  %s2256_s10 = sld [smem:[#allocation31_spill]] }
 0x113   : > { %s438_s1 = scalar_lea.vmem [#allocation8], %s2022_s17  ;;  %s444_s16 = scalar_lea.sflag [#allocation10], %s426_s11 }
 0x118   : > { %s2038_s7 = sand.u32 1, %s2255_s20   ;;  %p2257_p6 = scmp.ne.s32.totalorder %s2256_s10, 0 }
 0x119   : > { %s987_s3 = sshll.u32 %s2038_s7, 4 }
 0x11a   : > { %s447_s30 = scalar_lea.vmem [#allocation9], %s987_s3 }
 0x11b   : > { %1508 = dma.done.wait (%p2257_p6), %s444_s16, 272  }
 0x11c   : > { %1510 = vsyncadd (%p2257_p6), %s444_s16, 4294967024  ;;  %s455_s18 = scalar_lea.vmem [#allocation11], %s2038_s7  ;;  %s461_s21 = scalar_lea.sflag [#allocation13], %s426_s11 }
 0x11d   : > { %s464_s14 = scalar_lea.vmem [#allocation12], %s987_s3 }
 0x11e   : > { %1512 = dma.done.wait (%p2257_p6), %s461_s21, 272  }
 0x11f   : > { %1514 = vsyncadd (%p2257_p6), %s461_s21, 4294967024  ;;  %v1584_v0 = vmov 0.0   ;;  %vm1585_vm0 = vmmov 0   ;;  %v1197_v1 = vld [vmem:[%s464_s14] sm:$0xff]   ;;  %v1198_v2 = vld [vmem:[%s464_s14 + $0x8] sm:$0xff]   ;;  %vm559_vm1 = vcmask 261120  }
 0x120   : > { %1015 = vmatprep.subr.bf16.mxu0 %v1584_v0  ;;  %1019 = vmatprep.mubr.msk.bf16.mxu0 %vm1585_vm0, %v1584_v0  ;;  %v1199_v3 = vld [vmem:[%s447_s30] sm:$0xff]   ;;  %v1200_v4 = vld [vmem:[%s447_s30 + $0x8] sm:$0xff]   ;;  %s472_s15 = scalar_lea.vmem [#allocation14], %s2038_s7  ;;  %vm604_vm2 = vcmask 60416   ;;  %vm683_vm3 = vcmask 64512   ;;  %s2258_s6 = sld [smem:[#allocation22_spill]] }
 0x121   : > { %1023 = vmatprep.subr.bf16.mxu1 %v1584_v0  ;;  %1027 = vmatprep.mubr.msk.bf16.mxu1 %vm1585_vm0, %v1584_v0  ;;  %v535_v5 = vld [vmem:[%s430_s9] sm:$0xf]  ;;  %v606_v6 = vld [vmem:[%s2026_s25] sm:$0xf]  ;;  %v990_v7 = vld [vmem:[%s472_s15] ss:$0 sm:$0xff] }
 0x122   : > { %1016 = vmatpush3.bf16.msra.mxu0 %v1197_v1  ;;  %1024 = vmatpush3.bf16.msra.mxu1 %v1199_v3  ;;  %v994_v18 = vld [vmem:[%s455_s18] ss:$0 sm:$0xff]  ;;  %s2259_s0 = sld [smem:[#allocation27_spill]]  ;;  %s2260_s28 = sld [smem:[#allocation26_spill]] }
 0x123   : > { %1017 = vmatprep.subr.bf16.mxu0 %v1584_v0  ;;  %1025 = vmatprep.subr.bf16.mxu1 %v1584_v0  ;;  %v998_v23 = vld [vmem:[%s438_s1] ss:$0 sm:$0xff]  ;;  %s2261_s8 = sld [smem:[#allocation32_spill]]  ;;  %s2262_s3 = sld [smem:[#allocation42_spill]] }
 0x124   : > { %s1586_s18 = smov [#allocation15]  }
 0x125   : > { %s1419_s21 = sshll.u32 %s1586_s18, 4  ;;  %s1420_s21 = int_to_ptr.vmem [resolvable:$false] %s1419_s21 }
 0x126   : > { %1018 = vmatpush3.bf16.msra.mxu0 %v1198_v2  ;;  %1026 = vmatpush3.bf16.msra.mxu1 %v1200_v4  ;;  %s527_s17 = sand.u32 1, %s2258_s6   ;;  %s1421_s14 = scalar_lea.vmem %s1420_s21, 256 }
 0x127   : > { %1031 = vmatprep.subr.bf16.mxu0 %v1584_v0  ;;  %s989_s25 = sshll.u32 %s527_s17, 3  ;;  %s743_s16 = scalar_lea.sflag [#allocation5], %s527_s17 }
 0x128   : > { %s1001_s24 = sshll.u32 %s2259_s0, 2  ;;  %s529_s9 = scalar_lea.vmem [#allocation15], %s989_s25 }
 0x129   : > { %1020 = vmatmul.mubr.msk.bf16.vlgmr.msra.gmra.mrb[0].mxu0 %vm559_vm1, %v535_v5  ;;  %1028 = vmatmul.mubr.msk.bf16.vlgmr.msra.gmra.mrb[0].mxu1 %vm559_vm1, %v606_v6  ;;  %s755_s11 = sadd.s32 %s2260_s28, %s1001_s24  ;;  %s759_s20 = sshll.u32 %s529_s9, 4  ;;  %s2072_s20 = int_to_ptr.vmem [resolvable:$true] %s759_s20 }
 0x12a   : > { %1033 = vmatprep.mubr.msk.bf16.mxu0 %vm1585_vm0, %v1584_v0  ;;  %s1002_s27 = sshll.u32 %s755_s11, 7  ;;  %s1415_s30 = scalar_lea.vmem %s2072_s20, 128 }
 0x12b   : > { %s2070_s1 = scalar_lea.hbm %s2262_s3, %s1002_s27  ;;  %p1416_p2 = scmp.ne.s32.totalorder %s2072_s20, %s1415_s30 }
 0x12c   : > { %p2263_p7 = scmp.ne.s32.totalorder %s2261_s8, 0  ;;  %p1422_p12 = scmp.lt.s32.totalorder %s2072_s20, %s1420_s21 }
 0x12d   : > { %p1423_p9 = scmp.lt.s32.totalorder %s1421_s14, %s1415_s30 }
 0x12e   : > { %p1417_p3 = pnand %p1416_p2, %p2263_p7 }
 0x12f   : > { %p1424_p5 = por %p1423_p9, %p1422_p12 }
 0x130   : > { %p1418_p11 = pneg %p1417_p3 }
 0x132   : > { %p1425_p1 = pnand %p1424_p5, %p1418_p11 }
 0x1fc   : > { %v597_v8 = vpop.f32.mrb[0].mxu0  ;;  %v668_v14 = vpop.f32.mrb[0].mxu1 }
 0x1fd   : > { %v598_v9 = vadd.f32 %v990_v7, %v597_v8  ;;  %v1021_v10 = vpop.f32.mrb[1].mxu0  ;;  %v1029_v15 = vpop.f32.mrb[1].mxu1  ;;  %v669_v20 = vadd.f32 %v994_v18, %v668_v14 }
 0x1fe   : > { %v600_v11 = vpop.f32.mrb[2].mxu0  ;;  %v671_v16 = vpop.f32.mrb[2].mxu1 }
 0x1ff   : > { %v603_v12 = vpack.c.bf16 %v598_v9, %v598_v9  ;;  %v1022_v13 = vpop.f32.mrb[3].mxu0  ;;  %v1030_v17 = vpop.f32.mrb[3].mxu1  ;;  %v674_v22 = vpack.c.bf16 %v669_v20, %v669_v20 }
 0x201   : > { %605 = vst.msk [vmem:[#allocation2] sm:$0xf] %vm604_vm2, %v603_v12 }
 0x208   : > { %v675_v19 = vld [vmem:[#allocation2] sm:$0xf] }
 0x209   : > { %v688_v21 = vsel %vm683_vm3, %v675_v19, 0 }
 0x20a   : > { %1032 = vmatpush3.bf16.xpose.msra.mxu0 %v688_v21 }
 0x211   : > { %1034 = vmatmul.mubr.msk.bf16.vlgmr.msra.gmra.mrb[4].mxu0 %vm683_vm3, %v674_v22 }
 0x2e4   : > { %v724_v24 = vpop.f32.mrb[4].mxu0 }
 0x2e5   : > { %v725_v25 = vadd.f32 %v998_v23, %v724_v24  ;;  %v1035_v26 = vpop.f32.mrb[5].mxu0 }
 0x2e6   : > { %v727_v27 = vpop.f32.mrb[6].mxu0 }
 0x2e7   : > { %v1036_v28 = vpop.f32.mrb[7].mxu0  ;;  %v730_v29 = vsel %vm683_vm3, %v725_v25, -inf }
 0x2e8   : > { %731 = vmax.xlane.f32.xlu0 %v730_v29 }
 0x375   : > { %v732_v30 = vpop.xlane.xlu0 %731 }
 0x376   : > { %v733_v31 = vsub.f32 %v725_v25, %v732_v30 }
 0x378   : > { %v734_v32 = vmul.f32 1.442695, %v733_v31 }
 0x37a   : > { %1201 = vpow2.f32 %v734_v32 }
 0x384   : > { %v1202_v33 = vpop.eup %1201 }
 0x385   : > { %v736_v34 = vsel %vm683_vm3, %v1202_v33, 0.0 }
 0x386   : > { %737 = vadd.xlane.f32.xlu0 %v736_v34 }
 0x413   : > { %v738_v35 = vpop.xlane.xlu0 %737 }
 0x414   : > { %1203 = vrcp.f32 %v738_v35 }
 0x41e   : > { %v1204_v36 = vpop.eup %1203 }
 0x41f   : > { %v740_v37 = vmul.f32 %v1204_v36, %v1202_v33 }
 0x421   : > { %741 = vst.msk [vmem:[%s529_s9] sm:$0xff] %vm683_vm3, %v740_v37 }
 0x422   : > { %1428 = shalt.err (!%p1425_p1)
}
 0x423   : > { %s1429_s15 = scalar_lea.hbm %s2070_s1, 128  ;;  %s1433_s28 = scalar_lea.hbm %s2262_s3, 1024 }
 0x424   : > { %p1430_p8 = scmp.ne.s32.totalorder %s2070_s1, %s1429_s15  ;;  %p1434_p13 = scmp.lt.u32.totalorder %s2070_s1, %s2262_s3 }
 0x425   : > { %p1435_p10 = scmp.lt.u32.totalorder %s1433_s28, %s1429_s15  ;;  %p1437_p2 = scmp.lt.u32.totalorder %s1429_s15, %s2070_s1 }
 0x426   : > { %p1431_p0 = pnand %p1430_p8, %p2263_p7 }
 0x427   : > { %p1436_p6 = por %p1435_p10, %p1434_p13 }
 0x428   : > { %p1432_p4 = pneg %p1431_p0 }
 0x429   : > { %p1438_p3 = por %p1437_p2, %p1436_p6 }
 0x42b   : > { %p1439_p11 = pnand %p1438_p3, %p1432_p4 }
 0x42d   : > { %1442 = shalt.err (!%p1439_p11)
}
 0x42e   : > { %1051 = dma.vmem_to_hbm [thread:$0]  (%p2263_p7), %s2072_s20, 128, %s2070_s1, %s743_s16  }
 0x42f PF: > { %s2264_s24 = sld [smem:[#allocation28_spill]]  ;;  %s2265_s11 = sld [smem:[#allocation21_spill]] }
 0x430   : > { %s2266_s27 = sld [smem:[#allocation33_spill]] }
 0x435   : > { %p1080_p12 = scmp.ge.s32.totalorder %s2264_s24, 2  ;;  %s771_s9 = sand.u32 1, %s2265_s11  }
 0x436   : > { %p2267_p9 = scmp.ne.s32.totalorder %s2266_s27, 0  ;;  %s772_s10 = scalar_lea.sflag [#allocation5], %s771_s9 }
 0x438   : > { %p1076_p5 = pnand %p1080_p12, %p2267_p9 }
 0x43a   : > { %1516 = dma.done.wait (!%p1076_p5), %s772_s10, 128  }
 0x43b   : > { %1518 = vsyncadd (!%p1076_p5), %s772_s10, 4294967168  ;;  %s32_s14 = sadd.s32 1, %s2264_s24   ;;  %s2269_s24 = sld [smem:[#allocation22_spill]] }
 0x43c   : > { %p2101_p1 = scmp.ge.s32.totalorder %s32_s14, 10   ;;  %s2270_s27 = sld [smem:[#allocation23_spill]] }
 0x43d   : > { %s2271_s30 = sld [smem:[#allocation24_spill]]  ;;  %s2272_s8 = sld [smem:[#allocation25_spill]] }
 0x43e   : > { %s2273_s9 = sld [smem:[#allocation37_spill]]  ;;  %s2274_s20 = sld [smem:[#allocation35_spill]] }
 0x43f   : > { %s2275_s1 = sld [smem:[#allocation36_spill]]  ;;  %s2276_s25 = smov %s1529_s26 }
 0x440   : > { %s2277_s26 = smov %s1845_s23  ;;  %s2278_s28 = smov %s1541_s29 }
 0x441   : > { %s2279_s29 = smov %s1833_s22  ;;  %s2280_s10 = smov %s1565_s12 }
 0x442   : > { %s2281_s11 = smov %s1569_s13  ;;  %31 = sbr.rel (!%p2101_p1) target bundleno = 22 (0x16), region = 169 }
 0x444   : > { %s2282_s12 = smov %s2274_s20 }
 0x445   : > { %s2283_s13 = smov %s2275_s1 }
 0x449   :  { %777 = vsyncpa [#allocation4], 1 }
 0x44a   :  { %779 = vsyncpa [#allocation4 + $0x1], 1 }
 0x44b   :  { %780 = vsyncpa [#allocation7], 1 }
 0x44c   :  { %782 = vsyncpa [#allocation7 + $0x1], 1 }
 0x44d   :  { %783 = vsyncpa [#allocation10], 1 }
 0x44e   :  { %785 = vsyncpa [#allocation10 + $0x1], 1 }
 0x44f   :  { %786 = vsyncpa [#allocation13], 1 }
 0x450   :  { %788 = vsyncpa [#allocation13 + $0x1], 1 }
 0x451   :  { %789 = vsyncpa [#allocation5], 1 }
 0x452   :  { %791 = vsyncpa [#allocation5 + $0x1], 1 }

</bundles_post_ra>
